<compile_context>
chip_gen: v7x
topology: tpu7x:2x2x1
jax: 0.10.0
libtpu: 0.0.40
codegen_flags: <defaults>
</compile_context>

<pallas_src>
import jax
import jax.numpy as jnp
from jax.experimental import pallas as pl
from jax.experimental.pallas import tpu as pltpu


def _round_up(a: int, b: int) -> int:
    return ((a + b - 1) // b) * b


def _sublane_multiple(dtype) -> int:
    # f32 vreg sublane tile = 8 rows; sub-32-bit dtypes (bf16) pack 2x/sublane.
    return 16 if jnp.dtype(dtype).itemsize < 4 else 8


def _choose_tiles(K, M, compute_dtype, tile_m, tile_k):
    """Pick (tm, tk): 128-aligned, clamped for small problems."""
    tm = min(tile_m, _round_up(M, 128))
    tk = min(tile_k, _round_up(K, 128))
    # v7x megacore: if the M tile would swallow the whole output and M splits
    # cleanly into two 128-multiples, halve it so the j grid axis has >= 2
    # blocks and both TensorCores get work (harmless on v5e/v6e).
    m128 = _round_up(M, 128) // 128
    if tm >= m128 * 128 and m128 >= 2 and m128 % 2 == 0:
        tm = (m128 // 2) * 128
    return tm, tk


def prepare_weights(weight, bias, *, compute_dtype=jnp.float32,
                    tile_m: int = 512, tile_k: int = 1024):
    """One-time weight prep: transpose to (K, M), cast, pad to tile multiples.

    weight: (M, K), bias: (M,)  ->  prepared tuple reusable across calls.
    Hoist this out of the per-step path so the forward pass never re-pads or
    re-copies W in HBM.
    """
    M, K = weight.shape
    assert bias.shape == (M,), "bias shape mismatch"
    tm, tk = _choose_tiles(K, M, compute_dtype, tile_m, tile_k)
    K_pad, M_pad = _round_up(K, tk), _round_up(M, tm)

    wT = jnp.transpose(weight).astype(compute_dtype)          # (K, M)
    if (K_pad, M_pad) != (K, M):
        wT = jnp.pad(wT, ((0, K_pad - K), (0, M_pad - M)))

    b = bias.astype(jnp.float32).reshape(1, M)
    if M_pad != M:
        b = jnp.pad(b, ((0, 0), (0, M_pad - M)))

    return {"wT": wT, "bias": b, "MK": (M, K), "tiles": (tm, tk),
            "compute_dtype": jnp.dtype(compute_dtype)}


def _linear_kernel(x_ref, wt_ref, b_ref, o_ref):
    # x_ref: (tn, tk), wt_ref: (tk, tm), b_ref: (1, tm), o_ref: (tn, tm) f32.
    # o_ref's block index (i, j) is constant across the k axis, so the block
    # stays resident in VMEM and doubles as the f32 accumulator (no scratch).
    k = pl.program_id(2)
    part = jnp.dot(x_ref[...], wt_ref[...], preferred_element_type=jnp.float32)

    @pl.when(k == 0)
    def _init():
        o_ref[...] = part

    @pl.when(k > 0)
    def _accum():
        o_ref[...] += part

    @pl.when(k == pl.num_programs(2) - 1)
    def _finalize():
        o_ref[...] += b_ref[...]          # bias added once, last k step only


def manual_linear(x, weight=None, bias=None, *, prepared=None,
                  compute_dtype=jnp.float32,
                  tile_n: int = 512, tile_m: int = 512, tile_k: int = 1024,
                  small_fast_path: bool = True):
    """y = x @ weight.T + bias  (x: (N, K), weight: (M, K), bias: (M,)).

    Pass `prepared=prepare_weights(weight, bias, ...)` to reuse the padded /
    transposed weight across calls (recommended).  compute_dtype=bfloat16 is
    recommended for throughput (f32 accumulate); float32 default keeps
    bit-exact parity with the PyTorch module.
    """
    N, K = x.shape

    if prepared is None:
        assert weight is not None and bias is not None
        M, K2 = weight.shape
        assert K == K2, "in_features mismatch"
        # Tiny problems: fixed pallas/grid/DMA overhead dominates — plain dot.
        if small_fast_path and N * K * M < (1 << 20):
            return (x.astype(jnp.float32) @ weight.T.astype(jnp.float32)
                    + bias.astype(jnp.float32))
        prepared = prepare_weights(weight, bias, compute_dtype=compute_dtype,
                                   tile_m=tile_m, tile_k=tile_k)
    else:
        compute_dtype = prepared["compute_dtype"]

    wT_p, b_p = prepared["wT"], prepared["bias"]
    M, Kw = prepared["MK"]
    tm, tk = prepared["tiles"]
    assert K == Kw, "in_features mismatch with prepared weights"
    K_pad, M_pad = wT_p.shape

    sub = _sublane_multiple(compute_dtype)
    tn = min(tile_n, _round_up(N, sub))
    tn = _round_up(tn, sub)
    N_pad = _round_up(N, tn)

    x_p = x.astype(compute_dtype)
    if (N_pad, K_pad) != (N, K):
        x_p = jnp.pad(x_p, ((0, N_pad - N), (0, K_pad - K)))

    grid = (N_pad // tn, M_pad // tm, K_pad // tk)
    in_bytes = jnp.dtype(compute_dtype).itemsize

    # Double-buffered x / wT input tiles + double-buffered resident f32 output
    # (accumulator) tile.  Cap at 48 MiB: safely below v7x's 64 MiB/TC.
    vmem_need = 2 * (tn * tk + tk * tm) * in_bytes + 2 * tn * tm * 4
    vmem_limit = int(min(48 << 20, max(24 << 20, 2 * vmem_need)))

    cost = pl.CostEstimate(
        flops=2 * N_pad * K_pad * M_pad,
        transcendentals=0,
        # Account for re-streaming: x is re-read once per j block, W once per i.
        bytes_accessed=(N_pad * K_pad * in_bytes) * grid[1]
        + (K_pad * M_pad * in_bytes) * grid[0]
        + N_pad * M_pad * 4 + M_pad * 4,
    )

    out = pl.pallas_call(
        _linear_kernel,
        out_shape=jax.ShapeDtypeStruct((N_pad, M_pad), jnp.float32),
        grid_spec=pltpu.PrefetchScalarGridSpec(
            num_scalar_prefetch=0,
            grid=grid,
            in_specs=[
                pl.BlockSpec((tn, tk), lambda i, j, k: (i, k)),   # x tile
                pl.BlockSpec((tk, tm), lambda i, j, k: (k, j)),   # W.T tile
                pl.BlockSpec((1, tm), lambda i, j, k: (0, j)),    # bias tile
            ],
            out_specs=pl.BlockSpec((tn, tm), lambda i, j, k: (i, j)),
        ),
        compiler_params=pltpu.CompilerParams(
            dimension_semantics=("parallel", "parallel", "arbitrary"),
            vmem_limit_bytes=vmem_limit,
        ),
        cost_estimate=cost,
    )(x_p, wT_p, b_p)

    return out[:N, :M]


if __name__ == "__main__":
    key = jax.random.PRNGKey(0)
    k_x, k_w, k_x2, k_w2, k_b2 = jax.random.split(key, 5)

    # --- Case 1: module-scale shapes (batch=8, in=32, out=16), f32, exact ---
    N, in_features, out_features = 8, 32, 16
    x = jax.random.normal(k_x, (N, in_features), dtype=jnp.float32)
    weight = jax.random.normal(
        k_w, (out_features, in_features), dtype=jnp.float32) * 0.01  # randn*0.01
    bias = jnp.zeros((out_features,), dtype=jnp.float32)             # zeros

    # Force the Pallas path (the small-problem fast path would bypass it here).
    y = jax.block_until_ready(manual_linear(x, weight, bias,
                                            small_fast_path=False))
    y_ref = x @ weight.T + bias
    assert y.shape == (N, out_features)
    assert jnp.allclose(y, y_ref, atol=1e-5, rtol=1e-5), "case 1 mismatch"

    # --- Case 2: multi-tile 3x3x3 grid, bf16 compute / f32 accumulate, with
    #     one-time prepared weights reused across two forward calls. ---
    N2, K2, M2 = 160, 640, 384
    x2 = jax.random.normal(k_x2, (N2, K2), dtype=jnp.float32)
    w2 = jax.random.normal(k_w2, (M2, K2), dtype=jnp.float32) * 0.01
    b2 = jax.random.normal(k_b2, (M2,), dtype=jnp.float32)

    prep = prepare_weights(w2, b2, compute_dtype=jnp.bfloat16,
                           tile_m=128, tile_k=256)
    y2a = manual_linear(x2, prepared=prep, tile_n=64)
    y2b = manual_linear(x2 + 1.0, prepared=prep, tile_n=64)
    jax.block_until_ready((y2a, y2b))

    ref2a = x2 @ w2.T + b2
    ref2b = (x2 + 1.0) @ w2.T + b2
    assert y2a.shape == (N2, M2) and y2b.shape == (N2, M2)
    assert jnp.allclose(y2a, ref2a, atol=2e-2, rtol=2e-2), "case 2a mismatch"
    assert jnp.allclose(y2b, ref2b, atol=2e-2, rtol=2e-2), "case 2b mismatch"

    print("KERNEL_OK")
</pallas_src>

<mosaic_0001>
module attributes {stable_mosaic.version = 11 : i64} {
  func.func @_linear_kernel(%arg0: i32, %arg1: i32, %arg2: i32, %arg3: memref<8x128xf32, #tpu.memory_space<vmem>>, %arg4: memref<128x128xf32, #tpu.memory_space<vmem>>, %arg5: memref<1x128xf32, #tpu.memory_space<vmem>>, %arg6: memref<8x128xf32, #tpu.memory_space<vmem>>) attributes {dimension_semantics = [#tpu.dimension_semantics<parallel>, #tpu.dimension_semantics<parallel>, #tpu.dimension_semantics<arbitrary>], iteration_bounds = array<i64: 1, 1, 1>, scalar_prefetch = 0 : i64, scratch_operands = 0 : i64, tpu.core_type = #tpu.core_type<tc>, window_params = [{transform_indices = @transform_0, window_bounds = array<i64: 8, 128>}, {transform_indices = @transform_1, window_bounds = array<i64: 128, 128>}, {transform_indices = @transform_2, window_bounds = array<i64: 1, 128>}, {transform_indices = @transform_3, window_bounds = array<i64: 8, 128>}]} {
    %c0 = arith.constant 0 : index
    %c0_0 = arith.constant 0 : index
    %0 = vector.load %arg3[%c0, %c0_0] : memref<8x128xf32, #tpu.memory_space<vmem>>, vector<8x128xf32>
    %c0_1 = arith.constant 0 : index
    %c0_2 = arith.constant 0 : index
    %1 = vector.load %arg4[%c0_1, %c0_2] : memref<128x128xf32, #tpu.memory_space<vmem>>, vector<128x128xf32>
    %cst = arith.constant dense<0.000000e+00> : vector<8x128xf32>
    %2 = tpu.matmul %0, %1, %cst {dimension_numbers = #tpu.dot_dimension_numbers<[1], [0], [0], [1], [0, 0, 1, 1], [], []>} : vector<8x128xf32>, vector<128x128xf32>, vector<8x128xf32> -> vector<8x128xf32>
    %c0_i32 = arith.constant 0 : i32
    %3 = arith.cmpi eq, %arg2, %c0_i32 : i32
    %4 = arith.extui %3 : i1 to i32
    %c0_i32_3 = arith.constant 0 : i32
    %5 = arith.cmpi ne, %4, %c0_i32_3 : i32
    scf.if %5 {
      %c0_8 = arith.constant 0 : index
      %c0_9 = arith.constant 0 : index
      %12 = vector.load %arg6[%c0_8, %c0_9] : memref<8x128xf32, #tpu.memory_space<vmem>>, vector<8x128xf32>
      tpu.vector_store %arg6[%c0_8, %c0_9], %2 {strides = array<i32>} : memref<8x128xf32, #tpu.memory_space<vmem>>, vector<8x128xf32>,
    } else {
    }
    %c0_i32_4 = arith.constant 0 : i32
    %6 = arith.cmpi sgt, %arg2, %c0_i32_4 : i32
    %7 = arith.extui %6 : i1 to i32
    %c0_i32_5 = arith.constant 0 : i32
    %8 = arith.cmpi ne, %7, %c0_i32_5 : i32
    scf.if %8 {
      %c0_8 = arith.constant 0 : index
      %c0_9 = arith.constant 0 : index
      %12 = vector.load %arg6[%c0_8, %c0_9] : memref<8x128xf32, #tpu.memory_space<vmem>>, vector<8x128xf32>
      %13 = arith.addf %12, %2 : vector<8x128xf32>
      %c0_10 = arith.constant 0 : index
      %c0_11 = arith.constant 0 : index
      %14 = vector.load %arg6[%c0_10, %c0_11] : memref<8x128xf32, #tpu.memory_space<vmem>>, vector<8x128xf32>
      tpu.vector_store %arg6[%c0_10, %c0_11], %13 {strides = array<i32>} : memref<8x128xf32, #tpu.memory_space<vmem>>, vector<8x128xf32>,
    } else {
    }
    %c0_i32_6 = arith.constant 0 : i32
    %9 = arith.cmpi eq, %arg2, %c0_i32_6 : i32
    %10 = arith.extui %9 : i1 to i32
    %c0_i32_7 = arith.constant 0 : i32
    %11 = arith.cmpi ne, %10, %c0_i32_7 : i32
    scf.if %11 {
      %c0_8 = arith.constant 0 : index
      %c0_9 = arith.constant 0 : index
      %12 = vector.load %arg6[%c0_8, %c0_9] : memref<8x128xf32, #tpu.memory_space<vmem>>, vector<8x128xf32>
      %c0_10 = arith.constant 0 : index
      %c0_11 = arith.constant 0 : index
      %13 = vector.load %arg5[%c0_10, %c0_11] : memref<1x128xf32, #tpu.memory_space<vmem>>, vector<1x128xf32>
      %14 = vector.broadcast %13 : vector<1x128xf32> to vector<8x128xf32>
      %15 = arith.addf %12, %14 : vector<8x128xf32>
      %c0_12 = arith.constant 0 : index
      %c0_13 = arith.constant 0 : index
      %16 = vector.load %arg6[%c0_12, %c0_13] : memref<8x128xf32, #tpu.memory_space<vmem>>, vector<8x128xf32>
      tpu.vector_store %arg6[%c0_12, %c0_13], %15 {strides = array<i32>} : memref<8x128xf32, #tpu.memory_space<vmem>>, vector<8x128xf32>,
    } else {
    }
    return
  }
  func.func @transform_0(%arg0: i32, %arg1: i32, %arg2: i32) -> (i32, i32) {
    %c0_i32 = arith.constant 0 : i32
    return %arg0, %arg2 : i32, i32
  }
  func.func @transform_1(%arg0: i32, %arg1: i32, %arg2: i32) -> (i32, i32) {
    %c0_i32 = arith.constant 0 : i32
    return %arg2, %arg1 : i32, i32
  }
  func.func @transform_2(%arg0: i32, %arg1: i32, %arg2: i32) -> (i32, i32) {
    %c0_i32 = arith.constant 0 : i32
    %c0_i32_0 = arith.constant 0 : i32
    return %c0_i32, %arg1 : i32, i32
  }
  func.func @transform_3(%arg0: i32, %arg1: i32, %arg2: i32) -> (i32, i32) {
    %c0_i32 = arith.constant 0 : i32
    return %arg0, %arg1 : i32, i32
  }
}

</mosaic_0001>

<bundles_post_ra>
// kernel: tpu_custom_call.1
= control target key start
LH: loop header
LB: loop body
LE: loop exit
PB: predicated region body
PF: predicated region fallthrough
CT: control target
= control target key end

     0   :  { %8 = vsyncpa [#allocation3], 0  ;;  %s400_s0 = inlined_call_operand.hbm [shape: f32[8,128], index: 0, kind: input, shape index: {}]   ;;  %s401_s1 = inlined_call_operand.hbm [shape: f32[128,128], index: 1, kind: input, shape index: {}]   ;;  %s402_s2 = inlined_call_operand.vmem [shape: f32[1,128], index: 2, kind: input, shape index: {}]   ;;  %s403_s3 = inlined_call_operand.hbm [shape: f32[8,128], index: 3, kind: output, shape index: {}]  }
   0x1   :  { %9 = vsyncpa [#allocation6], 0 }
   0x2   :  { %10 = vsyncpa [#allocation4], 0  ;;  %s326_s12 = smov [#allocation2]   ;;  %s327_s14 = smov [#allocation5]  }
   0x3   :  { %s17_s13 = sshll.u32 %s326_s12, 4  ;;  %s26_s15 = sshll.u32 %s327_s14, 4  ;;  %s18_s13 = int_to_ptr.vmem [resolvable:$true] %s17_s13  ;;  %s354_s15 = int_to_ptr.vmem [resolvable:$true] %s26_s15 }
   0x4   :  { %s254_s18 = scalar_lea.hbm %s400_s0, 128 }
   0x5   :  { %p255_p0 = scmp.ne.s32.totalorder %s400_s0, %s254_s18  ;;  %p258_p1 = scmp.lt.u32.totalorder %s254_s18, %s400_s0 }
   0x7   :  { %p260_p2 = pnand %p258_p1, %p255_p0 }
   0x9   :  { %263 = shalt.err (!%p260_p2)
}
   0xa   :  { %s264_s23 = scalar_lea.vmem %s18_s13, 128  ;;  %p269_p4 = scmp.lt.s32.totalorder %s18_s13, %s18_s13 }
   0xb   :  { %p265_p3 = scmp.ne.s32.totalorder %s18_s13, %s264_s23  ;;  %p270_p5 = scmp.lt.s32.totalorder %s264_s23, %s264_s23 }
   0xd   :  { %p271_p6 = por %p270_p5, %p269_p4 }
   0xf   :  { %p272_p7 = pnand %p271_p6, %p265_p3 }
  0x11   :  { %275 = shalt.err (!%p272_p7)
}
  0x12   :  { %20 = dma.hbm_to_vmem [thread:$0]  %s400_s0, 128, %s18_s13, [#allocation3]  }
  0x13   :  { %s276_s28 = scalar_lea.hbm %s401_s1, 2048 }
  0x14   :  { %p277_p8 = scmp.ne.s32.totalorder %s401_s1, %s276_s28  ;;  %p280_p9 = scmp.lt.u32.totalorder %s276_s28, %s401_s1 }
  0x16   :  { %p282_p10 = pnand %p280_p9, %p277_p8 }
  0x18   :  { %285 = shalt.err (!%p282_p10)
}
  0x19   :  { %s286_s6 = scalar_lea.vmem %s354_s15, 2048  ;;  %p291_p12 = scmp.lt.s32.totalorder %s354_s15, %s354_s15 }
  0x1a   :  { %p287_p11 = scmp.ne.s32.totalorder %s354_s15, %s286_s6  ;;  %p292_p13 = scmp.lt.s32.totalorder %s286_s6, %s286_s6 }
  0x1c   :  { %p293_p0 = por %p292_p13, %p291_p12 }
  0x1e   :  { %p294_p1 = pnand %p293_p0, %p287_p11 }
  0x20   :  { %297 = shalt.err (!%p294_p1)
}
  0x21   :  { %s328_s0 = smov 128   ;;  %s329_s7 = smov 8  }
  0x22   :  { %32 = dma.hbm_to_vmem [thread:$0]  %s401_s1, 2048, %s354_s15, [#allocation6], %s328_s0, %s328_s0, %s329_s7  }
  0x23   :  { %320 = dma.done.wait [#allocation3], 128  }
  0x24   :  { %321 = vsyncadd [#allocation3], 4294967168 }
  0x25   :  { %322 = dma.done.wait [#allocation6], 2048  }
  0x26   :  { %323 = vsyncadd [#allocation6], 4294965248  ;;  %v330_v0 = vmov 0.0|0.0   ;;  %vm331_vm0 = vmmov 0   ;;  %v332_v1 = vmov 0.0   ;;  %v42_v2 = vld [vmem:[#allocation5] sm:$0xff] }
  0x27   :  { %222 = vmatprep.subr.bf16.mxu0 %v330_v0  ;;  %219 = vmatprep.mubr.msk.f32.mxu0 %vm331_vm0, %v332_v1  ;;  %v43_v3 = vld [vmem:[#allocation5 + $0x8] sm:$0xff]  ;;  %v44_v4 = vld [vmem:[#allocation5 + $0x10] sm:$0xff]  ;;  %v45_v6 = vld [vmem:[#allocation5 + $0x18] sm:$0xff]  ;;  %s333_s11 = smov [#allocation7]  }
  0x28   :  { %v223_v5 = vpack.c.bf16 %v43_v3, %v42_v2  ;;  %v226_v7 = vpack.c.bf16 %v45_v6, %v44_v4  ;;  %v46_v8 = vld [vmem:[#allocation5 + $0x20] sm:$0xff]  ;;  %v47_v9 = vld [vmem:[#allocation5 + $0x28] sm:$0xff]  ;;  %v48_v11 = vld [vmem:[#allocation5 + $0x30] sm:$0xff]  ;;  %s159_s12 = sshll.u32 %s333_s11, 4  ;;  %s160_s12 = int_to_ptr.vmem [resolvable:$true] %s159_s12 }
  0x29   :  { %v229_v10 = vpack.c.bf16 %v47_v9, %v46_v8  ;;  %v49_v12 = vld [vmem:[#allocation5 + $0x38] sm:$0xff]  ;;  %v50_v14 = vld [vmem:[#allocation5 + $0x40] sm:$0xff]  ;;  %v51_v15 = vld [vmem:[#allocation5 + $0x48] sm:$0xff]  ;;  %s298_s13 = scalar_lea.vmem %s160_s12, 128  ;;  %p303_p3 = scmp.lt.s32.totalorder %s160_s12, %s160_s12 }
  0x2a   :  { %224 = vmatpush3.bf16.msra.mxu0 %v223_v5  ;;  %v232_v13 = vpack.c.bf16 %v49_v12, %v48_v11  ;;  %v235_v16 = vpack.c.bf16 %v51_v15, %v50_v14  ;;  %v52_v17 = vld [vmem:[#allocation5 + $0x50] sm:$0xff]  ;;  %v53_v18 = vld [vmem:[#allocation5 + $0x58] sm:$0xff]  ;;  %v54_v20 = vld [vmem:[#allocation5 + $0x60] sm:$0xff]  ;;  %p299_p2 = scmp.ne.s32.totalorder %s160_s12, %s298_s13  ;;  %p304_p4 = scmp.lt.s32.totalorder %s298_s13, %s298_s13 }
  0x2b   :  { %225 = vmatprep.subr.bf16.mxu0 %v330_v0  ;;  %v238_v19 = vpack.c.bf16 %v53_v18, %v52_v17  ;;  %v55_v21 = vld [vmem:[#allocation5 + $0x68] sm:$0xff]  ;;  %v56_v23 = vld [vmem:[#allocation5 + $0x70] sm:$0xff]  ;;  %v57_v24 = vld [vmem:[#allocation5 + $0x78] sm:$0xff] }
  0x2c   :  { %v241_v22 = vpack.c.bf16 %v55_v21, %v54_v20  ;;  %v244_v25 = vpack.c.bf16 %v57_v24, %v56_v23  ;;  %v41_v26 = vld [vmem:[#allocation2] sm:$0xff]  ;;  %p305_p5 = por %p304_p4, %p303_p3 }
  0x2d   :  { %v169_v27 = vld [vmem:[%s402_s2] ss:$0 sm:$0xff] }
  0x2e   :  { %227 = vmatpush3.bf16.msra.mxu0 %v226_v7  ;;  %p306_p6 = pnand %p305_p5, %p299_p2 }
  0x2f   :  { %228 = vmatprep.subr.bf16.mxu0 %v330_v0 }
  0x32   :  { %230 = vmatpush3.bf16.msra.mxu0 %v229_v10 }
  0x33   :  { %231 = vmatprep.subr.bf16.mxu0 %v330_v0 }
  0x36   :  { %233 = vmatpush3.bf16.msra.mxu0 %v232_v13 }
  0x37   :  { %234 = vmatprep.subr.bf16.mxu0 %v330_v0 }
  0x3a   :  { %236 = vmatpush3.bf16.msra.mxu0 %v235_v16 }
  0x3b   :  { %237 = vmatprep.subr.bf16.mxu0 %v330_v0 }
  0x3e   :  { %239 = vmatpush3.bf16.msra.mxu0 %v238_v19 }
  0x3f   :  { %240 = vmatprep.subr.bf16.mxu0 %v330_v0 }
  0x42   :  { %242 = vmatpush3.bf16.msra.mxu0 %v241_v22 }
  0x43   :  { %243 = vmatprep.subr.bf16.mxu0 %v330_v0 }
  0x46   :  { %245 = vmatpush3.bf16.msra.mxu0 %v244_v25 }
  0x49   :  { %220 = vmatmul.mubr.f32.vlgmr.msra.gmra.mrb[0].mxu0 %v41_v26 }
 0x11c   :  { %v124_v28 = vpop.f32.mrb[0].mxu0 }
 0x11d   :  { %v221_v29 = vpop.f32.mrb[1].mxu0  ;;  %v151_v30 = vadd.f32 %v169_v27, %v124_v28 }
 0x11f   :  { %152 = vst [vmem:[#allocation7] sm:$0xff] %v151_v30 }
 0x120   :  { %309 = shalt.err (!%p306_p6)
}
 0x121   :  { %s310_s16 = scalar_lea.hbm %s403_s3, 128 }
 0x122   :  { %p311_p7 = scmp.ne.s32.totalorder %s403_s3, %s310_s16  ;;  %p314_p8 = scmp.lt.u32.totalorder %s310_s16, %s403_s3 }
 0x124   :  { %p316_p9 = pnand %p314_p8, %p311_p7 }
 0x126   :  { %319 = shalt.err (!%p316_p9)
}
 0x127   :  { %162 = dma.vmem_to_hbm [thread:$0]  %s160_s12, 128, %s403_s3, [#allocation4]  }
 0x128   :  { %324 = dma.done.wait [#allocation4], 128  }
 0x129   :  { %325 = vsyncadd [#allocation4], 4294967168 }
 0x12a   :  { %166 = vsyncpa [#allocation3], 1 }
 0x12b   :  { %167 = vsyncpa [#allocation6], 1 }
 0x12c   :  { %168 = vsyncpa [#allocation4], 1 }

</bundles_post_ra>
